<compile_context>
chip_gen: v6e
topology: v6e:2x2x1
jax: 0.10.0
libtpu: 0.0.40
codegen_flags: <defaults>
</compile_context>

<pallas_src>
import jax
import jax.numpy as jnp
from jax.experimental import pallas as pl
from jax.experimental.pallas import tpu as pltpu

_MAX_DMAS_IN_FLIGHT = 4          # concurrent HBM->HBM DMAs for large arrays
_MIN_BYTES_TO_CHUNK = 1 << 20    # below this a single whole-array DMA is plenty


def _make_dma_copy_kernel(chunks):
    """Build a gridless HBM->HBM copy kernel.

    chunks: None for a single whole-ref DMA, or a static tuple of
            (start, size) splits along axis 0 (one in-flight DMA per chunk).
    """

    def kernel(x_hbm, o_hbm, sems):
        copies = []
        if chunks is None:
            copies.append(pltpu.make_async_copy(x_hbm, o_hbm, sems.at[0]))
        else:
            for i, (start, size) in enumerate(chunks):
                copies.append(
                    pltpu.make_async_copy(
                        x_hbm.at[pl.ds(start, size)],
                        o_hbm.at[pl.ds(start, size)],
                        sems.at[i],
                    )
                )
        for c in copies:   # issue all DMAs back-to-back (all in flight)
            c.start()
        for c in copies:   # then drain
            c.wait()

    return kernel


def identity_copy(x: jax.Array) -> jax.Array:
    """Explicitly materialized copy of x via a direct HBM->HBM DMA kernel."""
    if x.size == 0 or x.ndim == 0:
        # Nothing to DMA (empty) or un-sliceable scalar; identity semantics hold.
        return x

    nbytes = x.size * x.dtype.itemsize
    d0 = x.shape[0]

    if nbytes >= _MIN_BYTES_TO_CHUNK and d0 >= 2:
        n_chunks = min(_MAX_DMAS_IN_FLIGHT, d0)
        base, rem = divmod(d0, n_chunks)
        chunks, start = [], 0
        for i in range(n_chunks):
            size = base + (1 if i < rem else 0)
            chunks.append((start, size))
            start += size
        chunks = tuple(chunks)
        n_sems = n_chunks
    else:
        chunks = None
        n_sems = 1

    return pl.pallas_call(
        _make_dma_copy_kernel(chunks),
        out_shape=jax.ShapeDtypeStruct(x.shape, x.dtype),
        in_specs=[pl.BlockSpec(memory_space=pl.ANY)],
        out_specs=pl.BlockSpec(memory_space=pl.ANY),
        scratch_shapes=[pltpu.SemaphoreType.DMA((n_sems,))],
        cost_estimate=pl.CostEstimate(
            flops=0,
            transcendentals=0,
            bytes_accessed=2 * nbytes,
        ),
    )(x)


def identity(x: jax.Array) -> jax.Array:
    """Pallas-backed Identity.forward: the true identity is zero HBM traffic."""
    return x


if __name__ == "__main__":
    key = jax.random.PRNGKey(0)

    # Small NCHW input consistent with typical image-model usage.
    x = jax.random.normal(key, (2, 4, 16, 16), dtype=jnp.float32)

    # Module semantics: zero-cost identity.
    y = identity(x)
    assert y.shape == x.shape and y.dtype == x.dtype
    assert bool(jnp.all(y == x))

    # Explicit-copy Pallas kernel (single whole-array HBM->HBM DMA).
    yc = jax.block_until_ready(jax.jit(identity_copy)(x))
    assert yc.shape == x.shape and yc.dtype == x.dtype
    assert bool(jnp.all(yc == x))

    # Ragged element count (3*5*7 = 105, not a multiple of 128): copied in its
    # original shape — no padding, no trailing slice, exactly 2*n bytes moved.
    x2 = jax.random.normal(key, (3, 5, 7), dtype=jnp.float32)
    y2 = jax.block_until_ready(jax.jit(identity_copy)(x2))
    assert y2.shape == x2.shape and y2.dtype == x2.dtype
    assert bool(jnp.all(y2 == x2))

    # 1 MiB input exercises the multi-DMA-in-flight path (leading-axis split).
    x3 = jax.random.normal(key, (2, 4, 128, 256), dtype=jnp.float32)
    y3 = jax.block_until_ready(jax.jit(identity_copy)(x3))
    assert y3.shape == x3.shape and y3.dtype == x3.dtype
    assert bool(jnp.all(y3 == x3))

    print("KERNEL_OK")
</pallas_src>

<mosaic_0001>
module attributes {stable_mosaic.version = 11 : i64} {
  func.func @kernel(%arg0: memref<2x4x16x16xf32, #tpu.memory_space<any>>, %arg1: memref<2x4x16x16xf32, #tpu.memory_space<any>>, %arg2: memref<1x!tpu.dma_semaphore, #tpu.memory_space<semaphore_mem>>) attributes {dimension_semantics = [], scalar_prefetch = 0 : i64, scratch_operands = 1 : i64, tpu.core_type = #tpu.core_type<tc>} {
    %c0_i32 = arith.constant 0 : i32
    %0 = tpu.memref_slice %arg2[%c0_i32] : memref<1x!tpu.dma_semaphore, #tpu.memory_space<semaphore_mem>> -> memref<1x!tpu.dma_semaphore, #tpu.memory_space<semaphore_mem>>
    %1 = tpu.memref_squeeze %0 : memref<1x!tpu.dma_semaphore, #tpu.memory_space<semaphore_mem>> -> memref<!tpu.dma_semaphore, #tpu.memory_space<semaphore_mem>>
    tpu.enqueue_dma source(%arg0 : memref<2x4x16x16xf32, #tpu.memory_space<any>>) target(%arg1 : memref<2x4x16x16xf32, #tpu.memory_space<any>>) target_semaphore(%1 : memref<!tpu.dma_semaphore, #tpu.memory_space<semaphore_mem>>)
    %c0_i32_0 = arith.constant 0 : i32
    %2 = tpu.memref_slice %arg2[%c0_i32_0] : memref<1x!tpu.dma_semaphore, #tpu.memory_space<semaphore_mem>> -> memref<1x!tpu.dma_semaphore, #tpu.memory_space<semaphore_mem>>
    %3 = tpu.memref_squeeze %2 : memref<1x!tpu.dma_semaphore, #tpu.memory_space<semaphore_mem>> -> memref<!tpu.dma_semaphore, #tpu.memory_space<semaphore_mem>>
    tpu.wait_dma2 semaphore(%3 : memref<!tpu.dma_semaphore, #tpu.memory_space<semaphore_mem>>) src(%arg0 : memref<2x4x16x16xf32, #tpu.memory_space<any>>) dst(%arg1 : memref<2x4x16x16xf32, #tpu.memory_space<any>>)
    return
  }
}

</mosaic_0001>

<bundles_post_ra>
// kernel: identity_copy.1
= control target key start
LH: loop header
LB: loop body
LE: loop exit
PB: predicated region body
PF: predicated region fallthrough
CT: control target
= control target key end

     0   :  { %s30_s6 = smov [#allocation2]   ;;  %s31_s7 = smov 131072   ;;  %s49_s0 = inlined_call_operand.hbm [shape: f32[2,4,16,16], index: 0, kind: input, shape index: {}]   ;;  %s50_s1 = inlined_call_operand.hbm [shape: f32[2,4,16,16], index: 1, kind: output, shape index: {}]  }
   0x1   :  { %s32_s8 = smov 0  }
   0x2   :  { %12 = dma.general %s49_s0, 2048, %s50_s1, %s30_s6, %s31_s7, [#allocation4], %s32_s8, 0  }
   0x3   :  { %28 = dma.done.wait [#allocation2], 2048 }
   0x4   :  { %29 = vsyncadd [#allocation2], 4294965248 }
   0x5   :  { %18 = vsyncmov [#allocation2] }
   0x8   :  { %s19_s13 = vpop.sfrf %18 }
   0x9   :  { %p24_p0 = scmp.ne.s32.totalorder %s19_s13, 0 }
   0xb   :  { %23 = shalt.err (%p24_p0)  }

</bundles_post_ra>
